<compile_context>
chip_gen: v7x
topology: tpu7x:2x2x1
jax: 0.10.0
libtpu: 0.0.40
codegen_flags: <defaults>
</compile_context>

<pallas_src>
import functools

import jax
import jax.numpy as jnp
from jax.experimental import pallas as pl
from jax.experimental.pallas import tpu as pltpu


# ----------------------------------------------------------------------------
# Kernel 1: fused graph+channel contraction
#   Y[(o,w), t] = sum_{c,v} M[(o,w),(c,v)] * X[(c,v), t]
# with a K (=C*V) reduction grid axis, an f32 accumulator scratch and fused
# per-row BatchNorm partial statistics (sum / sum of squares).
# ----------------------------------------------------------------------------
def _gcn_kernel(x_ref, m_ref, y_ref, stat_ref, acc_ref):
    k = pl.program_id(2)

    @pl.when(k == 0)
    def _init():
        acc_ref[...] = jnp.zeros_like(acc_ref)

    # Single MXU matmul, K = tK (a slice of C*V), lanes = tT.
    acc_ref[...] += jnp.dot(m_ref[...], x_ref[0],
                            preferred_element_type=jnp.float32)

    @pl.when(k == pl.num_programs(2) - 1)
    def _finalize():
        acc = acc_ref[...]                                    # (O*V, tT) f32
        y_ref[0] = acc.astype(y_ref.dtype)
        # Per-row BN partials (row = o*V + w); the V-grouping to per-channel
        # statistics is done on the tiny (N, nT, O*V, 2) array in the wrapper.
        s = jnp.sum(acc, axis=1, keepdims=True)               # (O*V, 1)
        ss = jnp.sum(acc * acc, axis=1, keepdims=True)        # (O*V, 1)
        stat_ref[0, 0] = jnp.concatenate([s, ss], axis=1)     # (O*V, 2)


# ----------------------------------------------------------------------------
# Kernel 2: BatchNorm apply (precomputed per-row scale/shift) + ReLU,
# elementwise on (O*V, tT) blocks; output aliased onto the y buffer.
# ----------------------------------------------------------------------------
def _bn_relu_kernel(y_ref, scale_ref, shift_ref, o_ref):
    y = y_ref[0].astype(jnp.float32)
    o_ref[0] = jnp.maximum(y * scale_ref[...] + shift_ref[...], 0.0).astype(o_ref.dtype)


# ----------------------------------------------------------------------------
# Generation-aware VMEM budgets and lane-dense tile pickers.
# ----------------------------------------------------------------------------
def _vmem_budgets():
    cap = 64 << 20  # conservative default (v7x per-TC VMEM)
    try:
        info = pltpu.get_tpu_info()
        cap = int(getattr(info, "vmem_capacity_bytes", cap) or cap)
    except Exception:
        pass
    # Leave ~20 MiB headroom for Mosaic internal scratch; never ask for >100 MiB.
    limit = max(min(cap - (20 << 20), 100 << 20), 16 << 20)
    return int(limit), int(limit) // 2


def _divisor_tiles(n):
    """Tile candidates for a dim of size n, largest first: the full dim and every
    multiple of 128 that divides n (keeps BlockSpecs lane-dense / (8,128)-legal)."""
    cands = [n]
    t = (n // 128) * 128
    while t >= 128:
        if t != n and n % t == 0:
            cands.append(t)
        t -= 128
    return cands


def _pick_tile_nopad(n, per_unit, fixed, budget):
    cands = _divisor_tiles(n)
    for t in cands:
        if fixed + per_unit * t <= budget:
            return t
    return cands[-1]


def _pick_time_tile(T, per_t, fixed, budget):
    """Pick a lane-dense T tile; if no divisor of T works, pad T to a multiple
    of 128 (zero padding is BN-neutral since the zero columns add 0 to sum/ssq)."""
    for t in _divisor_tiles(T):
        if fixed + per_t * t <= budget:
            return t, T
    Tp = ((T + 127) // 128) * 128
    for t in _divisor_tiles(Tp):
        if t != Tp and fixed + per_t * t <= budget:
            return t, Tp
    return min(128, Tp), Tp


# ----------------------------------------------------------------------------
# Wrapper
# ----------------------------------------------------------------------------
def unit_gcn_forward(x, A, conv_w, conv_b, gamma, beta, mask=None,
                     mask_learning=False, eps=1e-5,
                     compute_dtype=jnp.bfloat16):
    N, C, T, V = x.shape
    num_A = A.shape[0]
    O = conv_w.shape[1]
    OV, CV = O * V, C * V

    A_eff = (A * mask) if (mask_learning and mask is not None) else A
    # Conv bias intentionally dropped: a per-channel constant added before a
    # training-mode BatchNorm is removed exactly by the batch-mean subtraction.
    del conv_b

    hp = jax.lax.Precision.HIGHEST
    # Fused operator M[(o,w),(c,v)] = sum_i conv_w[i,o,c] * A_eff[i,v,w].
    M = jnp.einsum('ioc,ivw->owcv',
                   conv_w.astype(jnp.float32), A_eff.astype(jnp.float32),
                   precision=hp).reshape(OV, CV)

    # x as (N, C*V, T): lane-dense along T (one XLA transpose in the wrapper).
    xr = jnp.transpose(x, (0, 1, 3, 2)).reshape(N, CV, T).astype(jnp.float32)

    limit_bytes, tile_budget = _vmem_budgets()
    ds = jnp.dtype(compute_dtype).itemsize

    # K tile: keep the double-buffered M block to about a third of the budget.
    tK = _pick_tile_nopad(CV, per_unit=2 * OV * ds, fixed=0,
                          budget=tile_budget // 3)
    nK = CV // tK

    # T tile for kernel 1: x + y blocks (double-buffered) + f32 accumulator.
    per_t = 2 * tK * ds + 2 * OV * ds + OV * 4
    fixed = 2 * OV * tK * ds + 2 * OV * 2 * 4
    tT, Tp = _pick_time_tile(T, per_t, fixed, tile_budget)
    nT = Tp // tT

    if Tp != T:
        xr = jnp.pad(xr, ((0, 0), (0, 0), (0, Tp - T)))

    x_c = xr.astype(compute_dtype)
    M_c = M.astype(compute_dtype)

    y, stats = pl.pallas_call(
        _gcn_kernel,
        out_shape=(
            jax.ShapeDtypeStruct((N, OV, Tp), compute_dtype),   # intermediate y
            jax.ShapeDtypeStruct((N, nT, OV, 2), jnp.float32),  # BN partials
        ),
        grid_spec=pltpu.PrefetchScalarGridSpec(
            num_scalar_prefetch=0,
            grid=(N, nT, nK),
            in_specs=[
                pl.BlockSpec((1, tK, tT), lambda n, t, k: (n, k, t)),   # X
                pl.BlockSpec((OV, tK), lambda n, t, k: (0, k)),         # M
            ],
            out_specs=[
                pl.BlockSpec((1, OV, tT), lambda n, t, k: (n, 0, t)),
                pl.BlockSpec((1, 1, OV, 2), lambda n, t, k: (n, t, 0, 0)),
            ],
            scratch_shapes=[pltpu.VMEM((OV, tT), jnp.float32)],
        ),
        compiler_params=pltpu.CompilerParams(
            dimension_semantics=("parallel", "parallel", "arbitrary"),
            vmem_limit_bytes=limit_bytes),
    )(x_c, M_c)

    # Finalize training-mode BatchNorm2d statistics from the tiny partials
    # (no extra HBM pass over y).  Biased batch variance, fp32 accumulation.
    count = N * T * V   # padded columns contribute zero to both sums
    s_rows = jnp.sum(stats[..., 0], axis=(0, 1))                 # (O*V,)
    ss_rows = jnp.sum(stats[..., 1], axis=(0, 1))                # (O*V,)
    s = jnp.sum(s_rows.reshape(O, V), axis=1)                    # (O,)
    ss = jnp.sum(ss_rows.reshape(O, V), axis=1)                  # (O,)
    mean = s / count
    var = jnp.maximum(ss / count - mean * mean, 0.0)
    scale = gamma.astype(jnp.float32) / jnp.sqrt(var + eps)
    shift = beta.astype(jnp.float32) - mean * scale
    # Per-row (o*V + w) scale/shift for the (O*V, T) layout of y.
    scale_rows = jnp.repeat(scale, V)[:, None]                   # (O*V, 1)
    shift_rows = jnp.repeat(shift, V)[:, None]                   # (O*V, 1)

    # Kernel 2 gets its own, much larger blocks (normally one full sample/step).
    per_t2 = 4 * OV * ds
    fixed2 = 4 * OV * 4
    tT2 = _pick_tile_nopad(Tp, per_t2, fixed2, tile_budget)
    nT2 = Tp // tT2

    out = pl.pallas_call(
        _bn_relu_kernel,
        out_shape=jax.ShapeDtypeStruct((N, OV, Tp), compute_dtype),
        grid_spec=pltpu.PrefetchScalarGridSpec(
            num_scalar_prefetch=0,
            grid=(N, nT2),
            in_specs=[
                pl.BlockSpec((1, OV, tT2), lambda n, t: (n, 0, t)),
                pl.BlockSpec((OV, 1), lambda n, t: (0, 0)),
                pl.BlockSpec((OV, 1), lambda n, t: (0, 0)),
            ],
            out_specs=pl.BlockSpec((1, OV, tT2), lambda n, t: (n, 0, t)),
        ),
        input_output_aliases={0: 0},   # write BN+ReLU result back into y's buffer
        compiler_params=pltpu.CompilerParams(
            dimension_semantics=("parallel", "parallel"),
            vmem_limit_bytes=limit_bytes),
    )(y, scale_rows, shift_rows)

    # (N, O*V, Tp) -> (N, O, T, V): slice off padding, one XLA transpose.
    out = out[:, :, :T].reshape(N, O, V, T)
    out = jnp.transpose(out, (0, 1, 3, 2))
    return out.astype(x.dtype)


# ----------------------------------------------------------------------------
# Pure-JAX reference (mirrors the PyTorch forward, incl. conv bias) for checking
# ----------------------------------------------------------------------------
def unit_gcn_reference(x, A, conv_w, conv_b, gamma, beta, eps=1e-5):
    hp = jax.lax.Precision.HIGHEST
    y = 0.0
    for i in range(A.shape[0]):
        xa = jnp.einsum('nctv,vw->nctw', x, A[i], precision=hp)
        y = y + jnp.einsum('oc,nctw->notw', conv_w[i], xa, precision=hp) \
              + conv_b[i][None, :, None, None]
    mean = jnp.mean(y, axis=(0, 2, 3))
    var = jnp.mean((y - mean[None, :, None, None]) ** 2, axis=(0, 2, 3))
    yn = (y - mean[None, :, None, None]) / jnp.sqrt(var + eps)[None, :, None, None]
    yn = yn * gamma[None, :, None, None] + beta[None, :, None, None]
    return jnp.maximum(yn, 0.0)


if __name__ == "__main__":
    # Small shapes consistent with the module: N, C(in), T, V ; out_channels O ; num_A.
    N, C, T, V = 2, 4, 16, 16
    O = 8
    num_A = 3

    key = jax.random.PRNGKey(0)
    k_x, k_a, k_w, k_b, k_g, k_be = jax.random.split(key, 6)

    x = jax.random.normal(k_x, (N, C, T, V), dtype=jnp.float32)
    A = jax.random.uniform(k_a, (num_A, V, V), dtype=jnp.float32)
    conv_w = 0.1 * jax.random.normal(k_w, (num_A, O, C), dtype=jnp.float32)
    conv_b = 0.1 * jax.random.normal(k_b, (num_A, O), dtype=jnp.float32)
    gamma = 1.0 + 0.1 * jax.random.normal(k_g, (O,), dtype=jnp.float32)
    beta = 0.1 * jax.random.normal(k_be, (O,), dtype=jnp.float32)

    ref = unit_gcn_reference(x, A, conv_w, conv_b, gamma, beta)

    # fp32 debug path (tight numeric check).
    fwd_f32 = jax.jit(functools.partial(unit_gcn_forward, compute_dtype=jnp.float32))
    out_f32 = jax.block_until_ready(fwd_f32(x, A, conv_w, conv_b, gamma, beta))
    assert out_f32.shape == (N, O, T, V)
    d32 = float(jnp.max(jnp.abs(out_f32.astype(jnp.float32) - ref)))
    assert jnp.allclose(out_f32.astype(jnp.float32), ref, rtol=5e-4, atol=5e-4), \
        f"fp32 path max abs diff {d32}"

    # bf16 MXU path (performance default, looser tolerance vs fp32 reference).
    fwd_bf16 = jax.jit(functools.partial(unit_gcn_forward, compute_dtype=jnp.bfloat16))
    out_bf16 = jax.block_until_ready(fwd_bf16(x, A, conv_w, conv_b, gamma, beta))
    assert out_bf16.shape == (N, O, T, V)
    d16 = float(jnp.max(jnp.abs(out_bf16.astype(jnp.float32) - ref)))
    assert jnp.allclose(out_bf16.astype(jnp.float32), ref, rtol=5e-2, atol=5e-2), \
        f"bf16 path max abs diff {d16}"

    # TODO(synk): use_local_bn=True (BatchNorm1d over O*V), BN running-stat updates,
    # and kernel_size>1 / stride>1 temporal convs are not implemented; the forward
    # matches the module defaults (kernel_size=1, stride=1, use_local_bn=False).
    print("KERNEL_OK")
</pallas_src>

<mosaic_0001>
module attributes {stable_mosaic.version = 11 : i64} {
  func.func @_gcn_kernel(%arg0: i32, %arg1: i32, %arg2: i32, %arg3: memref<1x64x16xf32, #tpu.memory_space<vmem>>, %arg4: memref<128x64xf32, #tpu.memory_space<vmem>>, %arg5: memref<1x128x16xf32, #tpu.memory_space<vmem>>, %arg6: memref<1x1x128x2xf32, #tpu.memory_space<vmem>>, %arg7: memref<128x16xf32, #tpu.memory_space<vmem>>) attributes {dimension_semantics = [#tpu.dimension_semantics<parallel>, #tpu.dimension_semantics<parallel>, #tpu.dimension_semantics<arbitrary>], iteration_bounds = array<i64: 2, 1, 1>, scalar_prefetch = 0 : i64, scratch_operands = 1 : i64, tpu.core_type = #tpu.core_type<tc>, window_params = [{transform_indices = @transform_0, window_bounds = array<i64: 1, 64, 16>}, {transform_indices = @transform_1, window_bounds = array<i64: 128, 64>}, {transform_indices = @transform_2, window_bounds = array<i64: 1, 128, 16>}, {transform_indices = @transform_3, window_bounds = array<i64: 1, 1, 128, 2>}]} {
    %c0_i32 = arith.constant 0 : i32
    %0 = arith.cmpi eq, %arg2, %c0_i32 : i32
    %1 = arith.extui %0 : i1 to i32
    %c0_i32_0 = arith.constant 0 : i32
    %2 = arith.cmpi ne, %1, %c0_i32_0 : i32
    scf.if %2 {
      %cst_11 = arith.constant 0.000000e+00 : f32
      %13 = vector.broadcast %cst_11 : f32 to vector<128x16xf32>
      %c0_12 = arith.constant 0 : index
      %c0_13 = arith.constant 0 : index
      %14 = vector.load %arg7[%c0_12, %c0_13] : memref<128x16xf32, #tpu.memory_space<vmem>>, vector<128x16xf32>
      tpu.vector_store %arg7[%c0_12, %c0_13], %13 {strides = array<i32>} : memref<128x16xf32, #tpu.memory_space<vmem>>, vector<128x16xf32>,
    } else {
    }
    %c0 = arith.constant 0 : index
    %c0_1 = arith.constant 0 : index
    %3 = vector.load %arg7[%c0, %c0_1] : memref<128x16xf32, #tpu.memory_space<vmem>>, vector<128x16xf32>
    %c0_2 = arith.constant 0 : index
    %c0_3 = arith.constant 0 : index
    %4 = vector.load %arg4[%c0_2, %c0_3] : memref<128x64xf32, #tpu.memory_space<vmem>>, vector<128x64xf32>
    %c0_4 = arith.constant 0 : index
    %c0_5 = arith.constant 0 : index
    %c0_6 = arith.constant 0 : index
    %5 = vector.load %arg3[%c0_4, %c0_5, %c0_6] : memref<1x64x16xf32, #tpu.memory_space<vmem>>, vector<1x64x16xf32>
    %6 = vector.shape_cast %5 : vector<1x64x16xf32> to vector<64x16xf32>
    %cst = arith.constant dense<0.000000e+00> : vector<128x16xf32>
    %7 = tpu.matmul %4, %6, %cst {dimension_numbers = #tpu.dot_dimension_numbers<[1], [0], [0], [1], [0, 0, 1, 1], [], []>} : vector<128x64xf32>, vector<64x16xf32>, vector<128x16xf32> -> vector<128x16xf32>
    %8 = arith.addf %3, %7 : vector<128x16xf32>
    %c0_7 = arith.constant 0 : index
    %c0_8 = arith.constant 0 : index
    %9 = vector.load %arg7[%c0_7, %c0_8] : memref<128x16xf32, #tpu.memory_space<vmem>>, vector<128x16xf32>
    tpu.vector_store %arg7[%c0_7, %c0_8], %8 {strides = array<i32>} : memref<128x16xf32, #tpu.memory_space<vmem>>, vector<128x16xf32>,
    %c0_i32_9 = arith.constant 0 : i32
    %10 = arith.cmpi eq, %arg2, %c0_i32_9 : i32
    %11 = arith.extui %10 : i1 to i32
    %c0_i32_10 = arith.constant 0 : i32
    %12 = arith.cmpi ne, %11, %c0_i32_10 : i32
    scf.if %12 {
      %c0_11 = arith.constant 0 : index
      %c0_12 = arith.constant 0 : index
      %13 = vector.load %arg7[%c0_11, %c0_12] : memref<128x16xf32, #tpu.memory_space<vmem>>, vector<128x16xf32>
      %c0_13 = arith.constant 0 : index
      %c0_14 = arith.constant 0 : index
      %c0_15 = arith.constant 0 : index
      %14 = vector.load %arg5[%c0_13, %c0_14, %c0_15] : memref<1x128x16xf32, #tpu.memory_space<vmem>>, vector<1x128x16xf32>
      %15 = vector.shape_cast %14 : vector<1x128x16xf32> to vector<128x16xf32>
      %16 = vector.shape_cast %13 : vector<128x16xf32> to vector<1x128x16xf32>
      tpu.vector_store %arg5[%c0_13, %c0_14, %c0_15], %16 {strides = array<i32>} : memref<1x128x16xf32, #tpu.memory_space<vmem>>, vector<1x128x16xf32>,
      %cst_16 = arith.constant dense<0.000000e+00> : vector<128xf32>
      %17 = vector.multi_reduction <add>, %13, %cst_16 [1] : vector<128x16xf32> to vector<128xf32>
      %18 = vector.shape_cast %17 : vector<128xf32> to vector<128x1xf32>
      %19 = arith.mulf %13, %13 : vector<128x16xf32>
      %cst_17 = arith.constant dense<0.000000e+00> : vector<128xf32>
      %20 = vector.multi_reduction <add>, %19, %cst_17 [1] : vector<128x16xf32> to vector<128xf32>
      %21 = vector.shape_cast %20 : vector<128xf32> to vector<128x1xf32>
      %22 = tpu.concatenate %18, %21 in 1 : vector<128x1xf32>, vector<128x1xf32> -> vector<128x2xf32>
      %c0_18 = arith.constant 0 : index
      %c0_19 = arith.constant 0 : index
      %c0_20 = arith.constant 0 : index
      %c0_21 = arith.constant 0 : index
      %23 = vector.load %arg6[%c0_18, %c0_19, %c0_20, %c0_21] : memref<1x1x128x2xf32, #tpu.memory_space<vmem>>, vector<1x1x128x2xf32>
      %24 = vector.shape_cast %23 : vector<1x1x128x2xf32> to vector<128x2xf32>
      %25 = vector.shape_cast %22 : vector<128x2xf32> to vector<1x1x128x2xf32>
      tpu.vector_store %arg6[%c0_18, %c0_19, %c0_20, %c0_21], %25 {strides = array<i32>} : memref<1x1x128x2xf32, #tpu.memory_space<vmem>>, vector<1x1x128x2xf32>,
    } else {
    }
    return
  }
  func.func @transform_0(%arg0: i32, %arg1: i32, %arg2: i32) -> (i32, i32, i32) {
    %c0_i32 = arith.constant 0 : i32
    return %arg0, %arg2, %arg1 : i32, i32, i32
  }
  func.func @transform_1(%arg0: i32, %arg1: i32, %arg2: i32) -> (i32, i32) {
    %c0_i32 = arith.constant 0 : i32
    %c0_i32_0 = arith.constant 0 : i32
    return %c0_i32, %arg2 : i32, i32
  }
  func.func @transform_2(%arg0: i32, %arg1: i32, %arg2: i32) -> (i32, i32, i32) {
    %c0_i32 = arith.constant 0 : i32
    %c0_i32_0 = arith.constant 0 : i32
    return %arg0, %c0_i32, %arg1 : i32, i32, i32
  }
  func.func @transform_3(%arg0: i32, %arg1: i32, %arg2: i32) -> (i32, i32, i32, i32) {
    %c0_i32 = arith.constant 0 : i32
    %c0_i32_0 = arith.constant 0 : i32
    %c0_i32_1 = arith.constant 0 : i32
    return %arg0, %arg1, %c0_i32, %c0_i32_0 : i32, i32, i32, i32
  }
}

module attributes {stable_mosaic.version = 11 : i64} {
  func.func @_bn_relu_kernel(%arg0: i32, %arg1: i32, %arg2: memref<1x128x16xf32, #tpu.memory_space<vmem>>, %arg3: memref<128x1xf32, #tpu.memory_space<vmem>>, %arg4: memref<128x1xf32, #tpu.memory_space<vmem>>, %arg5: memref<1x128x16xf32, #tpu.memory_space<vmem>>) attributes {dimension_semantics = [#tpu.dimension_semantics<parallel>, #tpu.dimension_semantics<parallel>], iteration_bounds = array<i64: 2, 1>, scalar_prefetch = 0 : i64, scratch_operands = 0 : i64, tpu.core_type = #tpu.core_type<tc>, window_params = [{transform_indices = @transform_0, window_bounds = array<i64: 1, 128, 16>}, {pipeline_mode = #tpu.pipeline_mode<synchronous>, transform_indices = @transform_1, window_bounds = array<i64: 128, 1>}, {pipeline_mode = #tpu.pipeline_mode<synchronous>, transform_indices = @transform_2, window_bounds = array<i64: 128, 1>}, {transform_indices = @transform_3, window_bounds = array<i64: 1, 128, 16>}]} {
    %c0 = arith.constant 0 : index
    %c0_0 = arith.constant 0 : index
    %c0_1 = arith.constant 0 : index
    %0 = vector.load %arg2[%c0, %c0_0, %c0_1] : memref<1x128x16xf32, #tpu.memory_space<vmem>>, vector<1x128x16xf32>
    %1 = vector.shape_cast %0 : vector<1x128x16xf32> to vector<128x16xf32>
    %c0_2 = arith.constant 0 : index
    %c0_3 = arith.constant 0 : index
    %2 = vector.load %arg3[%c0_2, %c0_3] : memref<128x1xf32, #tpu.memory_space<vmem>>, vector<128x1xf32>
    %3 = vector.broadcast %2 : vector<128x1xf32> to vector<128x16xf32>
    %4 = arith.mulf %1, %3 : vector<128x16xf32>
    %c0_4 = arith.constant 0 : index
    %c0_5 = arith.constant 0 : index
    %5 = vector.load %arg4[%c0_4, %c0_5] : memref<128x1xf32, #tpu.memory_space<vmem>>, vector<128x1xf32>
    %6 = vector.broadcast %5 : vector<128x1xf32> to vector<128x16xf32>
    %7 = arith.addf %4, %6 : vector<128x16xf32>
    %cst = arith.constant 0.000000e+00 : f32
    %8 = vector.broadcast %cst : f32 to vector<128x16xf32>
    %9 = arith.maximumf %7, %8 : vector<128x16xf32>
    %c0_6 = arith.constant 0 : index
    %c0_7 = arith.constant 0 : index
    %c0_8 = arith.constant 0 : index
    %10 = vector.load %arg5[%c0_6, %c0_7, %c0_8] : memref<1x128x16xf32, #tpu.memory_space<vmem>>, vector<1x128x16xf32>
    %11 = vector.shape_cast %10 : vector<1x128x16xf32> to vector<128x16xf32>
    %12 = vector.shape_cast %9 : vector<128x16xf32> to vector<1x128x16xf32>
    tpu.vector_store %arg5[%c0_6, %c0_7, %c0_8], %12 {strides = array<i32>} : memref<1x128x16xf32, #tpu.memory_space<vmem>>, vector<1x128x16xf32>,
    return
  }
  func.func @transform_0(%arg0: i32, %arg1: i32) -> (i32, i32, i32) {
    %c0_i32 = arith.constant 0 : i32
    %c0_i32_0 = arith.constant 0 : i32
    return %arg0, %c0_i32, %arg1 : i32, i32, i32
  }
  func.func @transform_1(%arg0: i32, %arg1: i32) -> (i32, i32) {
    %c0_i32 = arith.constant 0 : i32
    %c0_i32_0 = arith.constant 0 : i32
    %c0_i32_1 = arith.constant 0 : i32
    return %c0_i32, %c0_i32_0 : i32, i32
  }
  func.func @transform_2(%arg0: i32, %arg1: i32) -> (i32, i32) {
    %c0_i32 = arith.constant 0 : i32
    %c0_i32_0 = arith.constant 0 : i32
    %c0_i32_1 = arith.constant 0 : i32
    return %c0_i32, %c0_i32_0 : i32, i32
  }
  func.func @transform_3(%arg0: i32, %arg1: i32) -> (i32, i32, i32) {
    %c0_i32 = arith.constant 0 : i32
    %c0_i32_0 = arith.constant 0 : i32
    return %arg0, %c0_i32, %arg1 : i32, i32, i32
  }
}

</mosaic_0001>

<bundles_post_ra>
// kernel: unit_gcn_forward.2
= control target key start
LH: loop header
LB: loop body
LE: loop exit
PB: predicated region body
PF: predicated region fallthrough
CT: control target
= control target key end

     0   :  { %s1083_s12 = smov 0   ;;  %s1085_s13 = smov 0   ;;  %s1345_s0 = inlined_call_operand.vmem [shape: f32[2,64,16], index: 0, kind: input, shape index: {}]   ;;  %s1346_s1 = inlined_call_operand.vmem [shape: f32[128,64], index: 1, kind: input, shape index: {}]   ;;  %s1347_s2 = inlined_call_operand.vmem [shape: f32[2,128,16], index: 2, kind: output, shape index: {0}]   ;;  %s1348_s3 = inlined_call_operand.vmem [shape: f32[2,1,128,2], index: 3, kind: output, shape index: {1}]  }
   0x1   :  { %s1087_s14 = smov 0  }
   0x2 LB: > { %s33_s15 = sadd.s32 1, %s1056_s13  ;;  %p897_p0 = scmp.ge.s32.totalorder %s1060_s14, 1  ;;  %s1060_s14 = sphi %s1087_s14, %s14_s14   ;;  %s1056_s13 = sphi %s1085_s13, %s1350_s13   ;;  %s1052_s12 = sphi %s1083_s12, %s1349_s12  }
   0x3   : > { %p35_p1 = scmp.ge.s32.totalorder %s33_s15, 2  ;;  %p184_p2 = scmp.lt.s32.totalorder %s1060_s14, 3 }
   0x5   : > { %s1352_s15 = smov (%p35_p1, %s33_s15), 0  ;;  %p185_p3 = pnand %p897_p0, %p184_p2 }
   0x6   : > { %p232_p4 = scmp.lt.s32.totalorder (!%p185_p3), %s1052_s12, 1  ;;  %v302_v0 = vld [vmem:[%s1346_s1] sm:$0xff] (!%p185_p3)  ;;  %vm326_vm0 = vcmask (!%p185_p3), 523264   ;;  %vm269_vm1 = vcmask (!%p185_p3), 130048   ;;  %v1062_v2 = vmov (!%p185_p3), 0.0   ;;  %v303_v15 = vld [vmem:[%s1346_s1 + $0x8] sm:$0xff] (!%p185_p3) }
   0x7   : > { %188 = sbr.rel (%p185_p3) target bundleno = 464 (0x1d0), region = 28  ;;  %v310_v1 = vld [vmem:[%s1346_s1 + $0x40] sm:$0xff] (!%p185_p3)  ;;  %965 = vmatprep.mubr.msk.f32.mxu0 (!%p185_p3), %vm326_vm0, %v302_v0  ;;  %271 = vst.msk [vmem:[#allocation2 + $0x8] sm:$0xff] (!%p185_p3), %vm269_vm1, %v1062_v2  ;;  %270 = vst.msk [vmem:[#allocation2] sm:$0xff] (!%p185_p3), %vm269_vm1, %v1062_v2  ;;  %v311_v16 = vld [vmem:[%s1346_s1 + $0x48] sm:$0xff] (!%p185_p3)  ;;  %vm700_vm2 = vcmask (!%p185_p3), 7168  }
   0x8   : > { %977 = vmatprep.mubr.msk.f32.mxu1 (!%p185_p3), %vm326_vm0, %v310_v1  ;;  %272 = vst.msk [vmem:[#allocation2 + $0x10] sm:$0xff] (!%p185_p3), %vm269_vm1, %v1062_v2  ;;  %273 = vst.msk [vmem:[#allocation2 + $0x18] sm:$0xff] (!%p185_p3), %vm269_vm1, %v1062_v2  ;;  %v304_v17 = vld [vmem:[%s1346_s1 + $0x10] sm:$0xff] (!%p185_p3)  ;;  %v305_v19 = vld [vmem:[%s1346_s1 + $0x18] sm:$0xff] (!%p185_p3)  ;;  %vm717_vm3 = vcmask (!%p185_p3), 15360  }
   0x9   : > { %274 = vst.msk [vmem:[#allocation2 + $0x20] sm:$0xff] (!%p185_p3), %vm269_vm1, %v1062_v2  ;;  %275 = vst.msk [vmem:[#allocation2 + $0x28] sm:$0xff] (!%p185_p3), %vm269_vm1, %v1062_v2  ;;  %v312_v18 = vld [vmem:[%s1346_s1 + $0x50] sm:$0xff] (!%p185_p3)  ;;  %v313_v20 = vld [vmem:[%s1346_s1 + $0x58] sm:$0xff] (!%p185_p3) }
   0xa   : > { %276 = vst.msk [vmem:[#allocation2 + $0x30] sm:$0xff] (!%p185_p3), %vm269_vm1, %v1062_v2  ;;  %277 = vst.msk [vmem:[#allocation2 + $0x38] sm:$0xff] (!%p185_p3), %vm269_vm1, %v1062_v2  ;;  %v306_v21 = vld [vmem:[%s1346_s1 + $0x20] sm:$0xff] (!%p185_p3)  ;;  %v307_v23 = vld [vmem:[%s1346_s1 + $0x28] sm:$0xff] (!%p185_p3) }
   0xb   : > { %278 = vst.msk [vmem:[#allocation2 + $0x40] sm:$0xff] (!%p185_p3), %vm269_vm1, %v1062_v2  ;;  %279 = vst.msk [vmem:[#allocation2 + $0x48] sm:$0xff] (!%p185_p3), %vm269_vm1, %v1062_v2  ;;  %v314_v22 = vld [vmem:[%s1346_s1 + $0x60] sm:$0xff] (!%p185_p3)  ;;  %v315_v24 = vld [vmem:[%s1346_s1 + $0x68] sm:$0xff] (!%p185_p3) }
   0xc   : > { %280 = vst.msk [vmem:[#allocation2 + $0x50] sm:$0xff] (!%p185_p3), %vm269_vm1, %v1062_v2  ;;  %281 = vst.msk [vmem:[#allocation2 + $0x58] sm:$0xff] (!%p185_p3), %vm269_vm1, %v1062_v2  ;;  %v308_v25 = vld [vmem:[%s1346_s1 + $0x30] sm:$0xff] (!%p185_p3)  ;;  %v309_v27 = vld [vmem:[%s1346_s1 + $0x38] sm:$0xff] (!%p185_p3) }
   0xd   : > { %282 = vst.msk [vmem:[#allocation2 + $0x60] sm:$0xff] (!%p185_p3), %vm269_vm1, %v1062_v2  ;;  %283 = vst.msk [vmem:[#allocation2 + $0x68] sm:$0xff] (!%p185_p3), %vm269_vm1, %v1062_v2  ;;  %v316_v26 = vld [vmem:[%s1346_s1 + $0x70] sm:$0xff] (!%p185_p3)  ;;  %v317_v28 = vld [vmem:[%s1346_s1 + $0x78] sm:$0xff] (!%p185_p3) }
   0xe   : > { %s1354_s12 = smov (!%p232_p4, %s1052_s12), 1  ;;  %284 = vst.msk [vmem:[#allocation2 + $0x70] sm:$0xff] %vm269_vm1, %v1062_v2  ;;  %285 = vst.msk [vmem:[#allocation2 + $0x78] sm:$0xff] %vm269_vm1, %v1062_v2  ;;  %v287_v29 = vld [vmem:[#allocation2 + $0x8] sm:$0xff]  ;;  %v286_v31 = vld [vmem:[#allocation2] sm:$0xff] }
   0xf   : > { %s922_s20 = sshll.u32 %s1354_s12, 6  ;;  %v289_v41 = vld [vmem:[#allocation2 + $0x18] sm:$0xff]  ;;  %v288_v43 = vld [vmem:[#allocation2 + $0x10] sm:$0xff]  ;;  %s923_s29 = sshll.u32 %s1354_s12, 7 }
  0x10   : > { %s242_s23 = scalar_lea.vmem %s1345_s0, %s922_s20  ;;  %v291_v53 = vld [vmem:[#allocation2 + $0x28] sm:$0xff]  ;;  %v290_v55 = vld [vmem:[#allocation2 + $0x20] sm:$0xff]  ;;  %s1199_s5 = scalar_lea.vmem %s1347_s2, %s923_s29 }
  0x11   : > { %v318_v3 = vld [vmem:[%s242_s23] sm:$0xff]  ;;  %v319_v4 = vld [vmem:[%s242_s23 + $0x8] sm:$0xff]  ;;  %v320_v5 = vld [vmem:[%s242_s23 + $0x10] sm:$0xff]  ;;  %s1286_s8 = scalar_lea.vmem %s1348_s3, %s923_s29 }
  0x12   : > { %v989_v6 = vpack.c.bf16 %v319_v4, %v318_v3  ;;  %v321_v7 = vld [vmem:[%s242_s23 + $0x18] sm:$0xff]  ;;  %v322_v9 = vld [vmem:[%s242_s23 + $0x20] sm:$0xff]  ;;  %v323_v10 = vld [vmem:[%s242_s23 + $0x28] sm:$0xff] }
  0x13   : > { %v993_v8 = vpack.c.bf16 %v321_v7, %v320_v5  ;;  %v997_v11 = vpack.c.bf16 %v323_v10, %v322_v9  ;;  %v324_v12 = vld [vmem:[%s242_s23 + $0x30] sm:$0xff]  ;;  %v325_v13 = vld [vmem:[%s242_s23 + $0x38] sm:$0xff]  ;;  %v295_v30 = vld [vmem:[#allocation2 + $0x48] sm:$0xff] }
  0x14   : > { %990 = vmatprep.subr.bf16.mxu0 %v989_v6  ;;  %1005 = vmatprep.subr.bf16.mxu1 %v989_v6  ;;  %v1001_v14 = vpack.c.bf16 %v325_v13, %v324_v12  ;;  %v294_v32 = vld [vmem:[#allocation2 + $0x40] sm:$0xff]  ;;  %v297_v42 = vld [vmem:[#allocation2 + $0x58] sm:$0xff]  ;;  %v296_v44 = vld [vmem:[#allocation2 + $0x50] sm:$0xff] }
  0x15   : > { %992 = vmatpush3.bf16.msra.mxu0 %v989_v6  ;;  %1009 = vmatpush3.bf16.msra.mxu1 %v989_v6  ;;  %v299_v54 = vld [vmem:[#allocation2 + $0x68] sm:$0xff]  ;;  %v298_v56 = vld [vmem:[#allocation2 + $0x60] sm:$0xff]  ;;  %v293_v63 = vld [vmem:[#allocation2 + $0x38] sm:$0xff] }
  0x16   : > { %994 = vmatprep.subr.bf16.mxu0 %v993_v8  ;;  %1006 = vmatprep.subr.bf16.mxu1 %v993_v8  ;;  %v292_v0 = vld [vmem:[#allocation2 + $0x30] sm:$0xff]  ;;  %v301_v5 = vld [vmem:[#allocation2 + $0x78] sm:$0xff] }
  0x19   : > { %996 = vmatpush3.bf16.msra.mxu0 %v993_v8  ;;  %1010 = vmatpush3.bf16.msra.mxu1 %v993_v8 }
  0x1a   : > { %998 = vmatprep.subr.bf16.mxu0 %v997_v11  ;;  %1007 = vmatprep.subr.bf16.mxu1 %v997_v11 }
  0x1d   : > { %1000 = vmatpush3.bf16.msra.mxu0 %v997_v11  ;;  %1011 = vmatpush3.bf16.msra.mxu1 %v997_v11  ;;  %v300_v11 = vld [vmem:[#allocation2 + $0x70] sm:$0xff] }
  0x1e   : > { %1002 = vmatprep.subr.bf16.mxu0 %v1001_v14  ;;  %1008 = vmatprep.subr.bf16.mxu1 %v1001_v14 }
  0x21   : > { %1004 = vmatpush3.bf16.msra.mxu0 %v1001_v14  ;;  %1012 = vmatpush3.bf16.msra.mxu1 %v1001_v14 }
  0x24   : > { %966 = vmatmul.mubr.msk.f32.vlgmr.msra.gmra.mrb[0].mxu0 %vm326_vm0, %v303_v15  ;;  %978 = vmatmul.mubr.msk.f32.vlgmr.msra.gmra.mrb[0].mxu1 %vm326_vm0, %v311_v16 }
  0x25   : > { %968 = vmatprep.mubr.msk.f32.mxu0 %vm326_vm0, %v304_v17  ;;  %980 = vmatprep.mubr.msk.f32.mxu1 %vm326_vm0, %v312_v18 }
  0x28   : > { %969 = vmatmul.mubr.msk.f32.gmra.mrb[2].mxu0 %vm326_vm0, %v305_v19  ;;  %981 = vmatmul.mubr.msk.f32.gmra.mrb[2].mxu1 %vm326_vm0, %v313_v20 }
  0x29   : > { %971 = vmatprep.mubr.msk.f32.mxu0 %vm326_vm0, %v306_v21  ;;  %983 = vmatprep.mubr.msk.f32.mxu1 %vm326_vm0, %v314_v22 }
  0x2c   : > { %972 = vmatmul.mubr.msk.f32.gmra.mrb[4].mxu0 %vm326_vm0, %v307_v23  ;;  %984 = vmatmul.mubr.msk.f32.gmra.mrb[4].mxu1 %vm326_vm0, %v315_v24 }
  0x2d   : > { %974 = vmatprep.mubr.msk.f32.mxu0 %vm326_vm0, %v308_v25  ;;  %986 = vmatprep.mubr.msk.f32.mxu1 %vm326_vm0, %v316_v26 }
  0x30   : > { %975 = vmatmul.mubr.msk.f32.gmra.mrb[6].mxu0 %vm326_vm0, %v309_v27  ;;  %987 = vmatmul.mubr.msk.f32.gmra.mrb[6].mxu1 %vm326_vm0, %v317_v28 }
  0xf7   : > { %v967_v33 = vpop.f32.mrb[0].mxu0  ;;  %v979_v34 = vpop.f32.mrb[0].mxu1 }
  0xf8   : > { %v521_v35 = vadd.f32 %v967_v33, %v287_v29  ;;  %v529_v36 = vadd.f32 %v979_v34, %v295_v30  ;;  %v441_v37 = vpop.f32.mrb[1].mxu0  ;;  %v481_v38 = vpop.f32.mrb[1].mxu1 }
  0xf9   : > { %v520_v39 = vadd.f32 %v441_v37, %v286_v31  ;;  %v528_v40 = vadd.f32 %v481_v38, %v294_v32 }
  0xfa   : > { %538 = vst.msk [vmem:[#allocation2 + $0x8] sm:$0xff] %vm269_vm1, %v521_v35  ;;  %546 = vst.msk [vmem:[#allocation2 + $0x48] sm:$0xff] %vm269_vm1, %v529_v36 }
  0xfb   : > { %537 = vst.msk [vmem:[#allocation2] sm:$0xff] %vm269_vm1, %v520_v39  ;;  %545 = vst.msk [vmem:[#allocation2 + $0x40] sm:$0xff] %vm269_vm1, %v528_v40  ;;  %v970_v45 = vpop.f32.mrb[2].mxu0  ;;  %v982_v46 = vpop.f32.mrb[2].mxu1 }
  0xfc   : > { %v523_v47 = vadd.f32 %v970_v45, %v289_v41  ;;  %v451_v48 = vpop.f32.mrb[3].mxu0  ;;  %v531_v49 = vadd.f32 %v982_v46, %v297_v42  ;;  %v491_v50 = vpop.f32.mrb[3].mxu1 }
  0xfd   : > { %v522_v51 = vadd.f32 %v451_v48, %v288_v43  ;;  %v530_v52 = vadd.f32 %v491_v50, %v296_v44 }
  0xfe   : > { %540 = vst.msk [vmem:[#allocation2 + $0x18] sm:$0xff] %vm269_vm1, %v523_v47  ;;  %548 = vst.msk [vmem:[#allocation2 + $0x58] sm:$0xff] %vm269_vm1, %v531_v49 }
  0xff   : > { %539 = vst.msk [vmem:[#allocation2 + $0x10] sm:$0xff] %vm269_vm1, %v522_v51  ;;  %547 = vst.msk [vmem:[#allocation2 + $0x50] sm:$0xff] %vm269_vm1, %v530_v52  ;;  %v973_v57 = vpop.f32.mrb[4].mxu0  ;;  %v985_v58 = vpop.f32.mrb[4].mxu1 }
 0x100   : > { %v525_v59 = vadd.f32 %v973_v57, %v291_v53  ;;  %v461_v60 = vpop.f32.mrb[5].mxu0  ;;  %v533_v61 = vadd.f32 %v985_v58, %v299_v54  ;;  %v501_v62 = vpop.f32.mrb[5].mxu1 }
 0x101   : > { %v565_v1 = vld [vmem:[#allocation2 + $0x48] sm:$0xff]  ;;  %v524_v3 = vadd.f32 %v461_v60, %v290_v55  ;;  %v532_v4 = vadd.f32 %v501_v62, %v298_v56 }
 0x102   : > { %v557_v2 = vld [vmem:[#allocation2 + $0x8] sm:$0xff]  ;;  %v615_v6 = vsel %vm269_vm1, %v565_v1, 0.0  ;;  %581 = vst.msk [vmem:[%s1199_s5 + $0x48] sm:$0xff] %vm269_vm1, %v565_v1  ;;  %v556_v9 = vld [vmem:[#allocation2] sm:$0xff]  ;;  %542 = vst.msk [vmem:[#allocation2 + $0x28] sm:$0xff] %vm269_vm1, %v525_v59  ;;  %v645_v24 = vmul.f32 %v565_v1, %v565_v1 }
 0x103   : > { %v591_v7 = vsel %vm269_vm1, %v557_v2, 0.0  ;;  %573 = vst.msk [vmem:[%s1199_s5 + $0x8] sm:$0xff] %vm269_vm1, %v557_v2  ;;  %v637_v8 = vmul.f32 %v557_v2, %v557_v2  ;;  %v564_v10 = vld [vmem:[#allocation2 + $0x40] sm:$0xff]  ;;  %550 = vst.msk [vmem:[#allocation2 + $0x68] sm:$0xff] %vm269_vm1, %v533_v61  ;;  %616 = vadd.xlane.f32.xlu1 %v615_v6  ;;  %v976_v12 = vpop.f32.mrb[6].mxu0  ;;  %v988_v13 = vpop.f32.mrb[6].mxu1  ;;  %v636_v31 = vmul.f32 %v556_v9, %v556_v9 }
 0x104   : > { %592 = vadd.xlane.f32.xlu0 %v591_v7  ;;  %572 = vst.msk [vmem:[%s1199_s5] sm:$0xff] %vm269_vm1, %v556_v9  ;;  %580 = vst.msk [vmem:[%s1199_s5 + $0x40] sm:$0xff] %vm269_vm1, %v564_v10  ;;  %v527_v14 = vadd.f32 %v976_v12, %v293_v63  ;;  %v471_v15 = vpop.f32.mrb[7].mxu0  ;;  %v535_v16 = vadd.f32 %v988_v13, %v301_v5  ;;  %v511_v17 = vpop.f32.mrb[7].mxu1  ;;  %v588_v23 = vsel %vm269_vm1, %v556_v9, 0.0  ;;  %v679_v29 = vsel %vm269_vm1, %v645_v24, 0.0 }
 0x105   : > { %541 = vst.msk [vmem:[#allocation2 + $0x20] sm:$0xff] %vm269_vm1, %v524_v3  ;;  %549 = vst.msk [vmem:[#allocation2 + $0x60] sm:$0xff] %vm269_vm1, %v532_v4  ;;  %v559_v18 = vld [vmem:[#allocation2 + $0x18] sm:$0xff]  ;;  %v526_v20 = vadd.f32 %v471_v15, %v292_v0  ;;  %v534_v21 = vadd.f32 %v511_v17, %v300_v11  ;;  %v655_v22 = vsel %vm269_vm1, %v637_v8, 0.0  ;;  %v612_v30 = vsel %vm269_vm1, %v564_v10, 0.0 }
 0x106   : > { %v567_v19 = vld [vmem:[#allocation2 + $0x58] sm:$0xff]  ;;  %575 = vst.msk [vmem:[%s1199_s5 + $0x18] sm:$0xff] %vm269_vm1, %v559_v18  ;;  %v566_v25 = vld [vmem:[#allocation2 + $0x50] sm:$0xff]  ;;  %544 = vst.msk [vmem:[#allocation2 + $0x38] sm:$0xff] %vm269_vm1, %v527_v14  ;;  %v597_v34 = vsel %vm269_vm1, %v559_v18, 0.0  ;;  %v652_v37 = vsel %vm269_vm1, %v636_v31, 0.0  ;;  %v644_v38 = vmul.f32 %v564_v10, %v564_v10  ;;  %v639_v46 = vmul.f32 %v559_v18, %v559_v18 }
 0x107   : > { %583 = vst.msk [vmem:[%s1199_s5 + $0x58] sm:$0xff] %vm269_vm1, %v567_v19  ;;  %v558_v26 = vld [vmem:[#allocation2 + $0x10] sm:$0xff]  ;;  %552 = vst.msk [vmem:[#allocation2 + $0x78] sm:$0xff] %vm269_vm1, %v535_v16  ;;  %656 = vadd.xlane.f32.xlu1 %v655_v22  ;;  %v621_v41 = vsel %vm269_vm1, %v567_v19, 0.0  ;;  %v618_v43 = vsel %vm269_vm1, %v566_v25, 0.0  ;;  %v646_v49 = vmul.f32 %v566_v25, %v566_v25  ;;  %v647_v50 = vmul.f32 %v567_v19, %v567_v19 }
 0x108   : > { %589 = vadd.xlane.f32.xlu0 %v588_v23  ;;  %582 = vst.msk [vmem:[%s1199_s5 + $0x50] sm:$0xff] %vm269_vm1, %v566_v25  ;;  %574 = vst.msk [vmem:[%s1199_s5 + $0x10] sm:$0xff] %vm269_vm1, %v558_v26  ;;  %v676_v42 = vsel %vm269_vm1, %v644_v38, 0.0  ;;  %v594_v44 = vsel %vm269_vm1, %v558_v26, 0.0  ;;  %v638_v45 = vmul.f32 %v558_v26, %v558_v26  ;;  %v661_v48 = vsel %vm269_vm1, %v639_v46, 0.0 }
 0x109   : > { %543 = vst.msk [vmem:[#allocation2 + $0x30] sm:$0xff] %vm269_vm1, %v526_v20  ;;  %551 = vst.msk [vmem:[#allocation2 + $0x70] sm:$0xff] %vm269_vm1, %v534_v21  ;;  %v561_v27 = vld [vmem:[#allocation2 + $0x28] sm:$0xff]  ;;  %v682_v51 = vsel %vm269_vm1, %v646_v49, 0.0  ;;  %v685_v52 = vsel %vm269_vm1, %v647_v50, 0.0 }
 0x10a   : > { %v569_v28 = vld [vmem:[#allocation2 + $0x68] sm:$0xff]  ;;  %577 = vst.msk [vmem:[%s1199_s5 + $0x28] sm:$0xff] %vm269_vm1, %v561_v27  ;;  %v658_v47 = vsel %vm269_vm1, %v638_v45, 0.0  ;;  %v603_v53 = vsel %vm269_vm1, %v561_v27, 0.0  ;;  %v641_v57 = vmul.f32 %v561_v27, %v561_v27 }
 0x10b   : > { %585 = vst.msk [vmem:[%s1199_s5 + $0x68] sm:$0xff] %vm269_vm1, %v569_v28  ;;  %680 = vadd.xlane.f32.xlu1 %v679_v29  ;;  %v627_v55 = vsel %vm269_vm1, %v569_v28, 0.0  ;;  %v649_v61 = vmul.f32 %v569_v28, %v569_v28 }
 0x10c   : > { %v560_v32 = vld [vmem:[#allocation2 + $0x20] sm:$0xff]  ;;  %613 = vadd.xlane.f32.xlu0 %v612_v30  ;;  %v667_v59 = vsel %vm269_vm1, %v641_v57, 0.0 }
 0x10d   : > { %v568_v33 = vld [vmem:[#allocation2 + $0x60] sm:$0xff]  ;;  %576 = vst.msk [vmem:[%s1199_s5 + $0x20] sm:$0xff] %vm269_vm1, %v560_v32  ;;  %v563_v35 = vld [vmem:[#allocation2 + $0x38] sm:$0xff]  ;;  %v600_v54 = vsel %vm269_vm1, %v560_v32, 0.0  ;;  %v640_v58 = vmul.f32 %v560_v32, %v560_v32  ;;  %v691_v63 = vsel %vm269_vm1, %v649_v61, 0.0 }
 0x10e   : > { %584 = vst.msk [vmem:[%s1199_s5 + $0x60] sm:$0xff] %vm269_vm1, %v568_v33  ;;  %v1242_v36 = vld [vmem:[#allocation2 + $0x78] sm:$0xff]  ;;  %579 = vst.msk [vmem:[%s1199_s5 + $0x38] sm:$0xff] %vm269_vm1, %v563_v35  ;;  %v624_v56 = vsel %vm269_vm1, %v568_v33, 0.0  ;;  %v648_v62 = vmul.f32 %v568_v33, %v568_v33  ;;  %v609_v1 = vsel %vm269_vm1, %v563_v35, 0.0  ;;  %v643_v5 = vmul.f32 %v563_v35, %v563_v35 }
 0x10f   : > { %587 = vst.msk [vmem:[%s1199_s5 + $0x78] sm:$0xff] %vm269_vm1, %v1242_v36  ;;  %598 = vadd.xlane.f32.xlu1 %v597_v34  ;;  %v664_v60 = vsel %vm269_vm1, %v640_v58, 0.0  ;;  %v633_v3 = vsel %vm269_vm1, %v1242_v36, 0.0  ;;  %v651_v9 = vmul.f32 %v1242_v36, %v1242_v36 }
 0x110   : > { %v562_v39 = vld [vmem:[#allocation2 + $0x30] sm:$0xff]  ;;  %653 = vadd.xlane.f32.xlu0 %v652_v37  ;;  %v688_v0 = vsel %vm269_vm1, %v648_v62, 0.0  ;;  %v673_v7 = vsel %vm269_vm1, %v643_v5, 0.0 }
 0x111   : > { %v570_v40 = vld [vmem:[#allocation2 + $0x70] sm:$0xff]  ;;  %578 = vst.msk [vmem:[%s1199_s5 + $0x30] sm:$0xff] %vm269_vm1, %v562_v39  ;;  %v606_v2 = vsel %vm269_vm1, %v562_v39, 0.0  ;;  %v642_v6 = vmul.f32 %v562_v39, %v562_v39  ;;  %v697_v11 = vsel %vm269_vm1, %v651_v9, 0.0 }
 0x112   : > { %586 = vst.msk [vmem:[%s1199_s5 + $0x70] sm:$0xff] %vm269_vm1, %v570_v40  ;;  %v630_v4 = vsel %vm269_vm1, %v570_v40, 0.0  ;;  %v650_v10 = vmul.f32 %v570_v40, %v570_v40 }
 0x113   : > { %622 = vadd.xlane.f32.xlu1 %v621_v41  ;;  %v670_v8 = vsel %vm269_vm1, %v642_v6, 0.0 }
 0x114   : > { %677 = vadd.xlane.f32.xlu0 %v676_v42  ;;  %v694_v12 = vsel %vm269_vm1, %v650_v10, 0.0 }
 0x117   : > { %595 = vadd.xlane.f32.xlu1 %v594_v44 }
 0x118   : > { %619 = vadd.xlane.f32.xlu0 %v618_v43 }
 0x11b   : > { %662 = vadd.xlane.f32.xlu1 %v661_v48 }
 0x11c   : > { %659 = vadd.xlane.f32.xlu0 %v658_v47 }
 0x11f   : > { %686 = vadd.xlane.f32.xlu1 %v685_v52 }
 0x120   : > { %683 = vadd.xlane.f32.xlu0 %v682_v51 }
 0x123   : > { %604 = vadd.xlane.f32.xlu1 %v603_v53 }
 0x124   : > { %601 = vadd.xlane.f32.xlu0 %v600_v54 }
 0x127   : > { %628 = vadd.xlane.f32.xlu1 %v627_v55 }
 0x128   : > { %625 = vadd.xlane.f32.xlu0 %v624_v56 }
 0x12b   : > { %668 = vadd.xlane.f32.xlu1 %v667_v59 }
 0x12c   : > { %665 = vadd.xlane.f32.xlu0 %v664_v60 }
 0x12f   : > { %692 = vadd.xlane.f32.xlu1 %v691_v63 }
 0x130   : > { %689 = vadd.xlane.f32.xlu0 %v688_v0 }
 0x133   : > { %610 = vadd.xlane.f32.xlu1 %v609_v1 }
 0x134   : > { %607 = vadd.xlane.f32.xlu0 %v606_v2 }
 0x137   : > { %634 = vadd.xlane.f32.xlu1 %v633_v3 }
 0x138   : > { %631 = vadd.xlane.f32.xlu0 %v630_v4 }
 0x13b   : > { %674 = vadd.xlane.f32.xlu1 %v673_v7 }
 0x13c   : > { %671 = vadd.xlane.f32.xlu0 %v670_v8 }
 0x13f   : > { %698 = vadd.xlane.f32.xlu1 %v697_v11 }
 0x140   : > { %695 = vadd.xlane.f32.xlu0 %v694_v12 }
 0x190   : > { %v617_v13 = vpop.xlane.xlu1 %616 }
 0x191   : > { %v593_v14 = vpop.xlane.xlu0 %592 }
 0x194   : > { %v657_v15 = vpop.xlane.xlu1 %656 }
 0x195   : > { %v590_v16 = vpop.xlane.xlu0 %589  ;;  %v702_v17 = vsel %vm700_vm2, %v593_v14, %v657_v15 }
 0x196   : > { %719 = vst.msk [vmem:[%s1286_s8 + $0x8] sm:$0xff] %vm717_vm3, %v702_v17 }
 0x198   : > { %v681_v18 = vpop.xlane.xlu1 %680 }
 0x199   : > { %v614_v19 = vpop.xlane.xlu0 %613  ;;  %v710_v20 = vsel %vm700_vm2, %v617_v13, %v681_v18 }
 0x19a   : > { %727 = vst.msk [vmem:[%s1286_s8 + $0x48] sm:$0xff] %vm717_vm3, %v710_v20 }
 0x19c   : > { %v599_v22 = vpop.xlane.xlu1 %598 }
 0x19d   : > { %v654_v21 = vpop.xlane.xlu0 %653 }
 0x19e   : > { %v701_v23 = vsel %vm700_vm2, %v590_v16, %v654_v21 }
 0x19f   : > { %718 = vst.msk [vmem:[%s1286_s8] sm:$0xff] %vm717_vm3, %v701_v23 }
 0x1a0   : > { %v623_v25 = vpop.xlane.xlu1 %622 }
 0x1a1   : > { %v678_v24 = vpop.xlane.xlu0 %677 }
 0x1a2   : > { %v709_v26 = vsel %vm700_vm2, %v614_v19, %v678_v24 }
 0x1a3   : > { %726 = vst.msk [vmem:[%s1286_s8 + $0x40] sm:$0xff] %vm717_vm3, %v709_v26 }
 0x1a4   : > { %v596_v28 = vpop.xlane.xlu1 %595 }
 0x1a5   : > { %v620_v27 = vpop.xlane.xlu0 %619 }
 0x1a8   : > { %v663_v30 = vpop.xlane.xlu1 %662 }
 0x1a9   : > { %v660_v29 = vpop.xlane.xlu0 %659  ;;  %v704_v32 = vsel %vm700_vm2, %v599_v22, %v663_v30 }
 0x1aa   : > { %v703_v31 = vsel %vm700_vm2, %v596_v28, %v660_v29  ;;  %721 = vst.msk [vmem:[%s1286_s8 + $0x18] sm:$0xff] %vm717_vm3, %v704_v32 }
 0x1ab   : > { %720 = vst.msk [vmem:[%s1286_s8 + $0x10] sm:$0xff] %vm717_vm3, %v703_v31 }
 0x1ac   : > { %v687_v34 = vpop.xlane.xlu1 %686 }
 0x1ad   : > { %v684_v33 = vpop.xlane.xlu0 %683  ;;  %v712_v36 = vsel %vm700_vm2, %v623_v25, %v687_v34 }
 0x1ae   : > { %v711_v35 = vsel %vm700_vm2, %v620_v27, %v684_v33  ;;  %729 = vst.msk [vmem:[%s1286_s8 + $0x58] sm:$0xff] %vm717_vm3, %v712_v36 }
 0x1af   : > { %728 = vst.msk [vmem:[%s1286_s8 + $0x50] sm:$0xff] %vm717_vm3, %v711_v35 }
 0x1b0   : > { %v605_v37 = vpop.xlane.xlu1 %604 }
 0x1b1   : > { %v602_v38 = vpop.xlane.xlu0 %601 }
 0x1b4   : > { %v629_v39 = vpop.xlane.xlu1 %628 }
 0x1b5   : > { %v626_v40 = vpop.xlane.xlu0 %625 }
 0x1b8   : > { %v669_v41 = vpop.xlane.xlu1 %668 }
 0x1b9   : > { %v666_v42 = vpop.xlane.xlu0 %665  ;;  %v706_v43 = vsel %vm700_vm2, %v605_v37, %v669_v41 }
 0x1ba   : > { %v705_v44 = vsel %vm700_vm2, %v602_v38, %v666_v42  ;;  %723 = vst.msk [vmem:[%s1286_s8 + $0x28] sm:$0xff] %vm717_vm3, %v706_v43 }
 0x1bb   : > { %722 = vst.msk [vmem:[%s1286_s8 + $0x20] sm:$0xff] %vm717_vm3, %v705_v44 }
 0x1bc   : > { %v693_v45 = vpop.xlane.xlu1 %692 }
 0x1bd   : > { %v690_v46 = vpop.xlane.xlu0 %689  ;;  %v714_v47 = vsel %vm700_vm2, %v629_v39, %v693_v45 }
 0x1be   : > { %v713_v48 = vsel %vm700_vm2, %v626_v40, %v690_v46  ;;  %731 = vst.msk [vmem:[%s1286_s8 + $0x68] sm:$0xff] %vm717_vm3, %v714_v47 }
 0x1bf   : > { %730 = vst.msk [vmem:[%s1286_s8 + $0x60] sm:$0xff] %vm717_vm3, %v713_v48 }
 0x1c0   : > { %v611_v49 = vpop.xlane.xlu1 %610 }
 0x1c1   : > { %v608_v50 = vpop.xlane.xlu0 %607 }
 0x1c4   : > { %v635_v51 = vpop.xlane.xlu1 %634 }
 0x1c5   : > { %v632_v52 = vpop.xlane.xlu0 %631 }
 0x1c8   : > { %v675_v53 = vpop.xlane.xlu1 %674 }
 0x1c9   : > { %v672_v54 = vpop.xlane.xlu0 %671  ;;  %v708_v55 = vsel %vm700_vm2, %v611_v49, %v675_v53 }
 0x1ca   : > { %v707_v56 = vsel %vm700_vm2, %v608_v50, %v672_v54  ;;  %725 = vst.msk [vmem:[%s1286_s8 + $0x38] sm:$0xff] %vm717_vm3, %v708_v55 }
 0x1cb   : > { %724 = vst.msk [vmem:[%s1286_s8 + $0x30] sm:$0xff] %vm717_vm3, %v707_v56 }
 0x1cc   : > { %v699_v57 = vpop.xlane.xlu1 %698 }
 0x1cd   : > { %v696_v58 = vpop.xlane.xlu0 %695  ;;  %v716_v59 = vsel %vm700_vm2, %v635_v51, %v699_v57 }
 0x1ce   : > { %v715_v60 = vsel %vm700_vm2, %v632_v52, %v696_v58  ;;  %733 = vst.msk [vmem:[%s1286_s8 + $0x78] sm:$0xff] %vm717_vm3, %v716_v59 }
 0x1cf   : > { %732 = vst.msk [vmem:[%s1286_s8 + $0x70] sm:$0xff] %vm717_vm3, %v715_v60 }
 0x1d0 PF: > { %s14_s14 = sadd.s32 1, %s1060_s14   ;;  %s1349_s12 = smov %s1056_s13 }
 0x1d1   : > { %p11_p5 = scmp.ge.s32.totalorder %s14_s14, 4   ;;  %s1350_s13 = smov %s1352_s15 }
 0x1d3   :  { %13 = sbr.rel (!%p11_p5) target bundleno = 2 (0x2), region = 81 }

// kernel: unit_gcn_forward.3
= control target key start
LH: loop header
LB: loop body
LE: loop exit
PB: predicated region body
PF: predicated region fallthrough
CT: control target
= control target key end

     0   :  { %s643_s12 = smov 0   ;;  %s645_s13 = smov 0   ;;  %s834_s0 = inlined_call_operand.vmem [shape: f32[2,128,16], index: 0, kind: input, shape index: {}, may-alias: {0,3}]   ;;  %s835_s1 = inlined_call_operand.vmem [shape: f32[128,1], index: 1, kind: input, shape index: {}]   ;;  %s836_s2 = inlined_call_operand.vmem [shape: f32[128,1], index: 2, kind: input, shape index: {}]   ;;  %s837_s3 = inlined_call_operand.vmem [shape: f32[2,128,16], index: 3, kind: output, shape index: {}, may-alias: {0,3}]  }
   0x1   :  { %s647_s14 = smov 0  }
   0x2 LB: > { %s25_s15 = sadd.s32 1, %s616_s13  ;;  %p562_p0 = scmp.ge.s32.totalorder %s620_s14, 1  ;;  %s620_s14 = sphi %s647_s14, %s13_s14   ;;  %s616_s13 = sphi %s645_s13, %s839_s13   ;;  %s612_s12 = sphi %s643_s12, %s838_s12  }
   0x3   : > { %p27_p1 = scmp.ge.s32.totalorder %s25_s15, 2  ;;  %p156_p2 = scmp.lt.s32.totalorder %s620_s14, 3 }
   0x5   : > { %s841_s15 = smov (%p27_p1, %s25_s15), 0  ;;  %p157_p3 = pnand %p562_p0, %p156_p2 }
   0x6   : > { %v220_v0 = vld [vmem:[%s835_s1 + $0x10] sm:$0xff] (!%p157_p3)  ;;  %v218_v1 = vld [vmem:[%s835_s1] sm:$0xff] (!%p157_p3)  ;;  %v622_v2 = vmov (!%p157_p3), 0   ;;  %v221_v3 = vld [vmem:[%s835_s1 + $0x18] sm:$0xff] (!%p157_p3)  ;;  %p186_p4 = scmp.lt.s32.totalorder (!%p157_p3), %s612_s12, 1  ;;  %vm458_vm0 = vcmask (!%p157_p3), 130048  }
   0x7   : > { %160 = sbr.rel (%p157_p3) target bundleno = 201 (0xc9), region = 32  ;;  %597 = vset.pattern.permute.xlu1 (!%p157_p3), %v622_v2  ;;  %596 = vset.pattern.permute.xlu0 (!%p157_p3), %v622_v2  ;;  %v219_v4 = vld [vmem:[%s835_s1 + $0x8] sm:$0xff] (!%p157_p3)  ;;  %v222_v6 = vld [vmem:[%s835_s1 + $0x20] sm:$0xff] (!%p157_p3)  ;;  %v225_v7 = vld [vmem:[%s835_s1 + $0x38] sm:$0xff] (!%p157_p3) }
   0x8   : > { %246 = vperm.xlu1 (!%p157_p3), %597, %v220_v0   ;;  %236 = vperm.xlu0 (!%p157_p3), %596, %v218_v1   ;;  %v223_v5 = vld [vmem:[%s835_s1 + $0x28] sm:$0xff] (!%p157_p3)  ;;  %v224_v8 = vld [vmem:[%s835_s1 + $0x30] sm:$0xff] (!%p157_p3)  ;;  %v226_v10 = vld [vmem:[%s835_s1 + $0x40] sm:$0xff] (!%p157_p3) }
   0x9   : > { %v227_v9 = vld [vmem:[%s835_s1 + $0x48] sm:$0xff] (!%p157_p3)  ;;  %v229_v11 = vld [vmem:[%s835_s1 + $0x58] sm:$0xff] (!%p157_p3)  ;;  %v228_v12 = vld [vmem:[%s835_s1 + $0x50] sm:$0xff] (!%p157_p3) }
   0xa   : > { %v231_v13 = vld [vmem:[%s835_s1 + $0x68] sm:$0xff] (!%p157_p3)  ;;  %v230_v14 = vld [vmem:[%s835_s1 + $0x60] sm:$0xff] (!%p157_p3)  ;;  %v233_v15 = vld [vmem:[%s835_s1 + $0x78] sm:$0xff] (!%p157_p3) }
   0xb   : > { %v232_v16 = vld [vmem:[%s835_s1 + $0x70] sm:$0xff] (!%p157_p3)  ;;  %v331_v17 = vld [vmem:[%s836_s2 + $0x8] sm:$0xff] (!%p157_p3)  ;;  %v330_v18 = vld [vmem:[%s836_s2] sm:$0xff] (!%p157_p3) }
   0xc   : > { %251 = vperm.xlu1 (!%p157_p3), %597, %v221_v3   ;;  %241 = vperm.xlu0 (!%p157_p3), %596, %v219_v4   ;;  %v333_v19 = vld [vmem:[%s836_s2 + $0x18] sm:$0xff] (!%p157_p3)  ;;  %v332_v20 = vld [vmem:[%s836_s2 + $0x10] sm:$0xff] (!%p157_p3)  ;;  %v335_v21 = vld [vmem:[%s836_s2 + $0x28] sm:$0xff] (!%p157_p3) }
   0xd   : > { %v334_v22 = vld [vmem:[%s836_s2 + $0x20] sm:$0xff] (!%p157_p3)  ;;  %v337_v23 = vld [vmem:[%s836_s2 + $0x38] sm:$0xff] (!%p157_p3)  ;;  %v336_v24 = vld [vmem:[%s836_s2 + $0x30] sm:$0xff] (!%p157_p3) }
   0xe   : > { %v339_v25 = vld [vmem:[%s836_s2 + $0x48] sm:$0xff]  ;;  %v338_v26 = vld [vmem:[%s836_s2 + $0x40] sm:$0xff]  ;;  %v341_v27 = vld [vmem:[%s836_s2 + $0x58] sm:$0xff]  ;;  %s843_s12 = smov (!%p186_p4, %s612_s12), 1 }
   0xf   : > { %v340_v28 = vld [vmem:[%s836_s2 + $0x50] sm:$0xff]  ;;  %v343_v29 = vld [vmem:[%s836_s2 + $0x68] sm:$0xff]  ;;  %v342_v30 = vld [vmem:[%s836_s2 + $0x60] sm:$0xff]  ;;  %s569_s7 = sshll.u32 %s843_s12, 7 }
  0x10   : > { %261 = vperm.xlu1 %597, %v223_v5   ;;  %256 = vperm.xlu0 %596, %v222_v6   ;;  %v345_v31 = vld [vmem:[%s836_s2 + $0x78] sm:$0xff]  ;;  %v344_v32 = vld [vmem:[%s836_s2 + $0x70] sm:$0xff]  ;;  %s193_s10 = scalar_lea.vmem %s834_s0, %s569_s7  ;;  %s783_s16 = scalar_lea.vmem %s837_s3, %s569_s7 }
  0x11   : > { %v202_v47 = vld [vmem:[%s193_s10] sm:$0xff]  ;;  %v203_v48 = vld [vmem:[%s193_s10 + $0x8] sm:$0xff]  ;;  %v204_v53 = vld [vmem:[%s193_s10 + $0x10] sm:$0xff] }
  0x12   : > { %v205_v54 = vld [vmem:[%s193_s10 + $0x18] sm:$0xff]  ;;  %v207_v59 = vld [vmem:[%s193_s10 + $0x28] sm:$0xff]  ;;  %v206_v60 = vld [vmem:[%s193_s10 + $0x20] sm:$0xff] }
  0x13   : > { %v209_v61 = vld [vmem:[%s193_s10 + $0x38] sm:$0xff]  ;;  %v208_v62 = vld [vmem:[%s193_s10 + $0x30] sm:$0xff]  ;;  %v211_v63 = vld [vmem:[%s193_s10 + $0x48] sm:$0xff] }
  0x14   : > { %271 = vperm.xlu1 %597, %v225_v7   ;;  %266 = vperm.xlu0 %596, %v224_v8   ;;  %v210_v0 = vld [vmem:[%s193_s10 + $0x40] sm:$0xff]  ;;  %v213_v3 = vld [vmem:[%s193_s10 + $0x58] sm:$0xff]  ;;  %v212_v4 = vld [vmem:[%s193_s10 + $0x50] sm:$0xff] }
  0x15   : > { %v215_v5 = vld [vmem:[%s193_s10 + $0x68] sm:$0xff]  ;;  %v214_v8 = vld [vmem:[%s193_s10 + $0x60] sm:$0xff] }
  0x18   : > { %281 = vperm.xlu1 %597, %v227_v9   ;;  %276 = vperm.xlu0 %596, %v226_v10   ;;  %v217_v9 = vld [vmem:[%s193_s10 + $0x78] sm:$0xff]  ;;  %v216_v10 = vld [vmem:[%s193_s10 + $0x70] sm:$0xff] }
  0x1c   : > { %291 = vperm.xlu1 %597, %v229_v11   ;;  %286 = vperm.xlu0 %596, %v228_v12  }
  0x20   : > { %301 = vperm.xlu1 %597, %v231_v13   ;;  %296 = vperm.xlu0 %596, %v230_v14  }
  0x24   : > { %311 = vperm.xlu1 %597, %v233_v15   ;;  %306 = vperm.xlu0 %596, %v232_v16  }
  0x28   : > { %353 = vperm.xlu1 %597, %v331_v17   ;;  %348 = vperm.xlu0 %596, %v330_v18  }
  0x2c   : > { %363 = vperm.xlu1 %597, %v333_v19   ;;  %358 = vperm.xlu0 %596, %v332_v20  }
  0x30   : > { %373 = vperm.xlu1 %597, %v335_v21   ;;  %368 = vperm.xlu0 %596, %v334_v22  }
  0x34   : > { %383 = vperm.xlu1 %597, %v337_v23   ;;  %378 = vperm.xlu0 %596, %v336_v24  }
  0x38   : > { %393 = vperm.xlu1 %597, %v339_v25   ;;  %388 = vperm.xlu0 %596, %v338_v26  }
  0x3c   : > { %403 = vperm.xlu1 %597, %v341_v27   ;;  %398 = vperm.xlu0 %596, %v340_v28  }
  0x40   : > { %413 = vperm.xlu1 %597, %v343_v29   ;;  %408 = vperm.xlu0 %596, %v342_v30  }
  0x44   : > { %423 = vperm.xlu1 %597, %v345_v31   ;;  %418 = vperm.xlu0 %596, %v344_v32  }
  0x87   : > { %v247_v33 = vpop.permute.xlu1 %246  ;;  %v237_v34 = vpop.permute.xlu0 %236 }
  0x88   : > { %v314_v51 = vmul.f32 %v237_v34, %v202_v47  ;;  %v316_v1 = vmul.f32 %v247_v33, %v204_v53 }
  0x8b   : > { %v252_v35 = vpop.permute.xlu1 %251  ;;  %v242_v36 = vpop.permute.xlu0 %241 }
  0x8c   : > { %v315_v52 = vmul.f32 %v242_v36, %v203_v48  ;;  %v317_v2 = vmul.f32 %v252_v35, %v205_v54 }
  0x8f   : > { %v262_v37 = vpop.permute.xlu1 %261  ;;  %v257_v38 = vpop.permute.xlu0 %256 }
  0x90   : > { %v319_v15 = vmul.f32 %v262_v37, %v207_v59  ;;  %v318_v16 = vmul.f32 %v257_v38, %v206_v60 }
  0x93   : > { %v272_v39 = vpop.permute.xlu1 %271  ;;  %v267_v40 = vpop.permute.xlu0 %266 }
  0x94   : > { %v321_v23 = vmul.f32 %v272_v39, %v209_v61  ;;  %v320_v24 = vmul.f32 %v267_v40, %v208_v62 }
  0x97   : > { %v760_v41 = vpop.permute.xlu1 %281  ;;  %v762_v42 = vpop.permute.xlu0 %276 }
  0x98   : > { %v323_v31 = vmul.f32 %v760_v41, %v211_v63  ;;  %v322_v32 = vmul.f32 %v762_v42, %v210_v0 }
  0x9b   : > { %v765_v43 = vpop.permute.xlu1 %291  ;;  %v767_v44 = vpop.permute.xlu0 %286 }
  0x9c   : > { %v325_v39 = vmul.f32 %v765_v43, %v213_v3  ;;  %v324_v40 = vmul.f32 %v767_v44, %v212_v4 }
  0x9f   : > { %v769_v45 = vpop.permute.xlu1 %301  ;;  %v771_v46 = vpop.permute.xlu0 %296 }
  0xa0   : > { %v327_v53 = vmul.f32 %v769_v45, %v215_v5  ;;  %v326_v54 = vmul.f32 %v771_v46, %v214_v8 }
  0xa3   : > { %v776_v49 = vpop.permute.xlu1 %311  ;;  %v778_v50 = vpop.permute.xlu0 %306 }
  0xa4   : > { %v329_v59 = vmul.f32 %v776_v49, %v217_v9  ;;  %v328_v45 = vmul.f32 %v778_v50, %v216_v10 }
  0xa7   : > { %v354_v55 = vpop.permute.xlu1 %353  ;;  %v349_v56 = vpop.permute.xlu0 %348 }
  0xa8   : > { %v427_v57 = vadd.f32 %v354_v55, %v315_v52  ;;  %v426_v58 = vadd.f32 %v349_v56, %v314_v51 }
  0xaa   : > { %v443_v6 = vmax.f32 %v427_v57, 0.0  ;;  %v442_v7 = vmax.f32 %v426_v58, 0.0 }
  0xab   : > { %v364_v11 = vpop.permute.xlu1 %363  ;;  %v359_v12 = vpop.permute.xlu0 %358 }
  0xac   : > { %460 = vst.msk [vmem:[%s783_s16 + $0x8] sm:$0xff] %vm458_vm0, %v443_v6  ;;  %459 = vst.msk [vmem:[%s783_s16] sm:$0xff] %vm458_vm0, %v442_v7  ;;  %v429_v13 = vadd.f32 %v364_v11, %v317_v2  ;;  %v428_v14 = vadd.f32 %v359_v12, %v316_v1 }
  0xae   : > { %v445_v17 = vmax.f32 %v429_v13, 0.0  ;;  %v444_v18 = vmax.f32 %v428_v14, 0.0 }
  0xaf   : > { %v374_v19 = vpop.permute.xlu1 %373  ;;  %v369_v20 = vpop.permute.xlu0 %368 }
  0xb0   : > { %462 = vst.msk [vmem:[%s783_s16 + $0x18] sm:$0xff] %vm458_vm0, %v445_v17  ;;  %461 = vst.msk [vmem:[%s783_s16 + $0x10] sm:$0xff] %vm458_vm0, %v444_v18  ;;  %v431_v21 = vadd.f32 %v374_v19, %v319_v15  ;;  %v430_v22 = vadd.f32 %v369_v20, %v318_v16 }
  0xb2   : > { %v447_v25 = vmax.f32 %v431_v21, 0.0  ;;  %v446_v26 = vmax.f32 %v430_v22, 0.0 }
  0xb3   : > { %v384_v27 = vpop.permute.xlu1 %383  ;;  %v379_v28 = vpop.permute.xlu0 %378 }
  0xb4   : > { %464 = vst.msk [vmem:[%s783_s16 + $0x28] sm:$0xff] %vm458_vm0, %v447_v25  ;;  %463 = vst.msk [vmem:[%s783_s16 + $0x20] sm:$0xff] %vm458_vm0, %v446_v26  ;;  %v433_v29 = vadd.f32 %v384_v27, %v321_v23  ;;  %v432_v30 = vadd.f32 %v379_v28, %v320_v24 }
  0xb6   : > { %v449_v33 = vmax.f32 %v433_v29, 0.0  ;;  %v448_v34 = vmax.f32 %v432_v30, 0.0 }
  0xb7   : > { %v394_v35 = vpop.permute.xlu1 %393  ;;  %v389_v36 = vpop.permute.xlu0 %388 }
  0xb8   : > { %466 = vst.msk [vmem:[%s783_s16 + $0x38] sm:$0xff] %vm458_vm0, %v449_v33  ;;  %465 = vst.msk [vmem:[%s783_s16 + $0x30] sm:$0xff] %vm458_vm0, %v448_v34  ;;  %v435_v37 = vadd.f32 %v394_v35, %v323_v31  ;;  %v434_v38 = vadd.f32 %v389_v36, %v322_v32 }
  0xba   : > { %v451_v41 = vmax.f32 %v435_v37, 0.0  ;;  %v450_v47 = vmax.f32 %v434_v38, 0.0 }
  0xbb   : > { %v404_v42 = vpop.permute.xlu1 %403  ;;  %v399_v48 = vpop.permute.xlu0 %398 }
  0xbc   : > { %468 = vst.msk [vmem:[%s783_s16 + $0x48] sm:$0xff] %vm458_vm0, %v451_v41  ;;  %467 = vst.msk [vmem:[%s783_s16 + $0x40] sm:$0xff] %vm458_vm0, %v450_v47  ;;  %v437_v51 = vadd.f32 %v404_v42, %v325_v39  ;;  %v436_v52 = vadd.f32 %v399_v48, %v324_v40 }
  0xbe   : > { %v453_v43 = vmax.f32 %v437_v51, 0.0  ;;  %v452_v55 = vmax.f32 %v436_v52, 0.0 }
  0xbf   : > { %v414_v44 = vpop.permute.xlu1 %413  ;;  %v409_v56 = vpop.permute.xlu0 %408 }
  0xc0   : > { %470 = vst.msk [vmem:[%s783_s16 + $0x58] sm:$0xff] %vm458_vm0, %v453_v43  ;;  %469 = vst.msk [vmem:[%s783_s16 + $0x50] sm:$0xff] %vm458_vm0, %v452_v55  ;;  %v439_v57 = vadd.f32 %v414_v44, %v327_v53  ;;  %v438_v58 = vadd.f32 %v409_v56, %v326_v54 }
  0xc2   : > { %v455_v60 = vmax.f32 %v439_v57, 0.0  ;;  %v454_v61 = vmax.f32 %v438_v58, 0.0 }
  0xc3   : > { %v424_v46 = vpop.permute.xlu1 %423  ;;  %v419_v62 = vpop.permute.xlu0 %418 }
  0xc4   : > { %472 = vst.msk [vmem:[%s783_s16 + $0x68] sm:$0xff] %vm458_vm0, %v455_v60  ;;  %471 = vst.msk [vmem:[%s783_s16 + $0x60] sm:$0xff] %vm458_vm0, %v454_v61  ;;  %v441_v63 = vadd.f32 %v424_v46, %v329_v59  ;;  %v440_v0 = vadd.f32 %v419_v62, %v328_v45 }
  0xc6   : > { %v457_v1 = vmax.f32 %v441_v63, 0.0  ;;  %v456_v2 = vmax.f32 %v440_v0, 0.0 }
  0xc8   : > { %474 = vst.msk [vmem:[%s783_s16 + $0x78] sm:$0xff] %vm458_vm0, %v457_v1  ;;  %473 = vst.msk [vmem:[%s783_s16 + $0x70] sm:$0xff] %vm458_vm0, %v456_v2 }
  0xc9 PF: > { %s13_s14 = sadd.s32 1, %s620_s14   ;;  %s838_s12 = smov %s616_s13 }
  0xca   : > { %p10_p5 = scmp.ge.s32.totalorder %s13_s14, 4   ;;  %s839_s13 = smov %s841_s15 }
  0xcc   :  { %12 = sbr.rel (!%p10_p5) target bundleno = 2 (0x2), region = 62 }

</bundles_post_ra>
